<compile_context>
chip_gen: v7x
topology: tpu7x:2x2x1
jax: 0.10.0
libtpu: 0.0.40
codegen_flags: <defaults>
</compile_context>

<pallas_src>
import functools

import jax
import jax.numpy as jnp
from jax.experimental import pallas as pl
from jax.experimental.pallas import tpu as pltpu


def _contrastive_kernel(x0_ref, x1_ref, y_ref, out_ref, acc_ref, *,
                        margin, scale, batch, tile, batch_axis):
    """One batch tile. batch_axis==0 -> (TB, D) layout, ==1 -> (D, TB)."""
    i = pl.program_id(0)

    @pl.when(i == 0)
    def _init():
        acc_ref[...] = jnp.zeros_like(acc_ref)

    feature_axis = 1 - batch_axis

    # Upcast in-register (inputs may be bf16 / fp16 in HBM).
    x0 = x0_ref[...].astype(jnp.float32)
    x1 = x1_ref[...].astype(jnp.float32)
    y = y_ref[...].astype(jnp.float32)            # (TB, 1) or (1, TB)

    diff = x0 - x1
    dist_sq = jnp.sum(diff * diff, axis=feature_axis, keepdims=True)
    dist = jnp.sqrt(dist_sq)
    mdist = jnp.maximum(margin - dist, 0.0)
    loss = y * dist_sq + (1.0 - y) * (mdist * mdist)

    # Mask tail rows when B % tile != 0 (padded OOB inputs are unspecified;
    # the where also squashes any NaN/Inf they might produce).
    idx = jax.lax.broadcasted_iota(jnp.int32, loss.shape, batch_axis) + i * tile
    loss = jnp.where(idx < batch, loss, 0.0)

    acc_ref[...] += jnp.sum(loss, keepdims=True)

    @pl.when(i == pl.num_programs(0) - 1)
    def _finalize():
        out_ref[...] = acc_ref[...] * scale       # scale = 1 / (2 * B), precomputed


def _choose_batch_tile(b, d, itemsize, batch_on_lanes):
    """Largest batch tile keeping 2 inputs x 2 buffers well under scoped VMEM."""
    per_buffer_budget = 2 * 1024 * 1024           # bytes per single input buffer
    tile = per_buffer_budget // max(1, d * itemsize)
    align = 128 if batch_on_lanes else 8
    tile = max(align, (tile // align) * align)
    tile = min(tile, 1024)
    if tile >= b:
        return b                                  # single full-batch block
    return tile


def contrastive_loss(x0, x1, y, margin=1.0, *, block_batch=None):
    """x0, x1: (B, D) float32/bf16; y: (B,) labels. Returns scalar float32."""
    assert x0.shape == x1.shape and x0.ndim == 2, "x0/x1 must be (B, D)"
    b, d = x0.shape

    # Lane-dense layout choice: if the feature dim is small, put B on the
    # 128-lane axis so the per-row vectors are lane-dense.
    batch_on_lanes = (d < 128) and (b > d)

    if batch_on_lanes:
        x0_in, x1_in = x0.T, x1.T                 # (D, B)
        y_in = y.astype(jnp.float32).reshape(1, b)
        batch_axis = 1
    else:
        x0_in, x1_in = x0, x1                     # (B, D)
        y_in = y.astype(jnp.float32).reshape(b, 1)
        batch_axis = 0

    itemsize = jnp.dtype(x0.dtype).itemsize
    if block_batch is None:
        tb = _choose_batch_tile(b, d, itemsize, batch_on_lanes)
    else:
        tb = min(int(block_batch), b)
        if tb < b:
            align = 128 if batch_on_lanes else 8
            tb = max(align, (tb // align) * align)
    grid = (pl.cdiv(b, tb),)

    if batch_on_lanes:
        x_block, x_map = (d, tb), (lambda i: (0, i))
        y_block, y_map = (1, tb), (lambda i: (0, i))
    else:
        x_block, x_map = (tb, d), (lambda i: (i, 0))
        y_block, y_map = (tb, 1), (lambda i: (i, 0))

    kernel = functools.partial(
        _contrastive_kernel,
        margin=float(margin),
        scale=1.0 / (2.0 * float(b)),
        batch=b,
        tile=tb,
        batch_axis=batch_axis,
    )

    out = pl.pallas_call(
        kernel,
        out_shape=jax.ShapeDtypeStruct((1, 1), jnp.float32),
        grid=grid,
        in_specs=[
            pl.BlockSpec(x_block, x_map),
            pl.BlockSpec(x_block, x_map),
            pl.BlockSpec(y_block, y_map),
        ],
        out_specs=pl.BlockSpec((1, 1), lambda i: (0, 0)),
        scratch_shapes=[pltpu.VMEM((1, 1), jnp.float32)],
        compiler_params=pltpu.CompilerParams(
            dimension_semantics=("arbitrary",),
            vmem_limit_bytes=32 * 1024 * 1024,
        ),
    )(x0_in, x1_in, y_in)

    return out[0, 0]


def _reference(x0, x1, y, margin=1.0):
    x0 = x0.astype(jnp.float32)
    x1 = x1.astype(jnp.float32)
    y = y.astype(jnp.float32)
    diff = x0 - x1
    dist_sq = jnp.sum(diff ** 2, axis=1)
    dist = jnp.sqrt(dist_sq)
    mdist = jnp.maximum(margin - dist, 0.0)
    loss = y * dist_sq + (1.0 - y) * mdist ** 2
    return jnp.sum(loss) / 2.0 / x0.shape[0]


if __name__ == "__main__":
    key = jax.random.PRNGKey(0)

    # Test 1: small (B, D) layout, single block.
    k0, k1, k2 = jax.random.split(key, 3)
    B, D = 8, 32
    x0 = jax.random.normal(k0, (B, D), dtype=jnp.float32)
    x1 = jax.random.normal(k1, (B, D), dtype=jnp.float32)
    y = jax.random.bernoulli(k2, 0.5, (B,)).astype(jnp.float32)
    out = jax.block_until_ready(contrastive_loss(x0, x1, y, margin=1.0))
    ref = _reference(x0, x1, y, margin=1.0)
    assert jnp.allclose(out, ref, rtol=1e-5, atol=1e-5), (out, ref)

    # Test 2: batch-tiled (B, D) layout with a masked tail tile (50 % 16 != 0).
    k3, k4, k5 = jax.random.split(k2, 3)
    B, D = 50, 256
    x0 = jax.random.normal(k3, (B, D), dtype=jnp.float32)
    x1 = jax.random.normal(k4, (B, D), dtype=jnp.float32)
    y = jax.random.bernoulli(k5, 0.5, (B,)).astype(jnp.float32)
    out = jax.block_until_ready(
        contrastive_loss(x0, x1, y, margin=1.0, block_batch=16))
    ref = _reference(x0, x1, y, margin=1.0)
    assert jnp.allclose(out, ref, rtol=1e-5, atol=1e-5), (out, ref)

    # Test 3: small feature dim -> lane-dense transposed (D, B) layout, tiled
    # with masked tail, bf16 inputs upcast inside the kernel.
    k6, k7, k8 = jax.random.split(k5, 3)
    B, D = 300, 2
    x0 = jax.random.normal(k6, (B, D), dtype=jnp.bfloat16)
    x1 = jax.random.normal(k7, (B, D), dtype=jnp.bfloat16)
    y = jax.random.bernoulli(k8, 0.5, (B,)).astype(jnp.float32)
    out = jax.block_until_ready(
        contrastive_loss(x0, x1, y, margin=1.0, block_batch=128))
    ref = _reference(x0, x1, y, margin=1.0)
    assert jnp.allclose(out, ref, rtol=1e-3, atol=1e-3), (out, ref)

    print("KERNEL_OK")
</pallas_src>

<mosaic_0001>
module attributes {stable_mosaic.version = 11 : i64} {
  func.func @_contrastive_kernel(%arg0: i32, %arg1: memref<8x32xf32, #tpu.memory_space<vmem>>, %arg2: memref<8x32xf32, #tpu.memory_space<vmem>>, %arg3: memref<8x1xf32, #tpu.memory_space<vmem>>, %arg4: memref<1x1xf32, #tpu.memory_space<vmem>>, %arg5: memref<1x1xf32, #tpu.memory_space<vmem>>) attributes {dimension_semantics = [#tpu.dimension_semantics<arbitrary>], iteration_bounds = array<i64: 1>, scalar_prefetch = 0 : i64, scratch_operands = 1 : i64, tpu.core_type = #tpu.core_type<tc>, window_params = [{transform_indices = @transform_0, window_bounds = array<i64: 8, 32>}, {transform_indices = @transform_1, window_bounds = array<i64: 8, 32>}, {transform_indices = @transform_2, window_bounds = array<i64: 8, 1>}, {pipeline_mode = #tpu.pipeline_mode<synchronous>, transform_indices = @transform_3, window_bounds = array<i64: 1, 1>}]} {
    %c0_i32 = arith.constant 0 : i32
    %0 = arith.cmpi eq, %arg0, %c0_i32 : i32
    %1 = arith.extui %0 : i1 to i32
    %c0_i32_0 = arith.constant 0 : i32
    %2 = arith.cmpi ne, %1, %c0_i32_0 : i32
    scf.if %2 {
      %cst_18 = arith.constant 0.000000e+00 : f32
      %40 = vector.broadcast %cst_18 : f32 to vector<1x1xf32>
      %c0_19 = arith.constant 0 : index
      %c0_20 = arith.constant 0 : index
      %41 = vector.load %arg5[%c0_19, %c0_20] : memref<1x1xf32, #tpu.memory_space<vmem>>, vector<1x1xf32>
      tpu.vector_store %arg5[%c0_19, %c0_20], %40 {strides = array<i32>} : memref<1x1xf32, #tpu.memory_space<vmem>>, vector<1x1xf32>,
    } else {
    }
    %c0 = arith.constant 0 : index
    %c0_1 = arith.constant 0 : index
    %3 = vector.load %arg1[%c0, %c0_1] : memref<8x32xf32, #tpu.memory_space<vmem>>, vector<8x32xf32>
    %c0_2 = arith.constant 0 : index
    %c0_3 = arith.constant 0 : index
    %4 = vector.load %arg2[%c0_2, %c0_3] : memref<8x32xf32, #tpu.memory_space<vmem>>, vector<8x32xf32>
    %c0_4 = arith.constant 0 : index
    %c0_5 = arith.constant 0 : index
    %5 = vector.load %arg3[%c0_4, %c0_5] : memref<8x1xf32, #tpu.memory_space<vmem>>, vector<8x1xf32>
    %6 = arith.subf %3, %4 : vector<8x32xf32>
    %7 = arith.mulf %6, %6 : vector<8x32xf32>
    %cst = arith.constant dense<0.000000e+00> : vector<8xf32>
    %8 = vector.multi_reduction <add>, %7, %cst [1] : vector<8x32xf32> to vector<8xf32>
    %9 = vector.shape_cast %8 : vector<8xf32> to vector<8x1xf32>
    %10 = math.sqrt %9 : vector<8x1xf32>
    %cst_6 = arith.constant 1.000000e+00 : f32
    %11 = vector.broadcast %cst_6 : f32 to vector<8x1xf32>
    %12 = arith.subf %11, %10 : vector<8x1xf32>
    %cst_7 = arith.constant 0.000000e+00 : f32
    %13 = vector.broadcast %cst_7 : f32 to vector<8x1xf32>
    %14 = arith.maximumf %12, %13 : vector<8x1xf32>
    %15 = arith.mulf %5, %9 : vector<8x1xf32>
    %cst_8 = arith.constant 1.000000e+00 : f32
    %16 = vector.broadcast %cst_8 : f32 to vector<8x1xf32>
    %17 = arith.subf %16, %5 : vector<8x1xf32>
    %18 = arith.mulf %14, %14 : vector<8x1xf32>
    %19 = arith.mulf %17, %18 : vector<8x1xf32>
    %20 = arith.addf %15, %19 : vector<8x1xf32>
    %21 = tpu.iota {dimensions = array<i32: 0>} : vector<8x1xi32>
    %c8_i32 = arith.constant 8 : i32
    %22 = arith.muli %arg0, %c8_i32 : i32
    %23 = vector.broadcast %22 : i32 to vector<8x1xi32>
    %24 = arith.addi %21, %23 : vector<8x1xi32>
    %c8_i32_9 = arith.constant 8 : i32
    %25 = vector.broadcast %c8_i32_9 : i32 to vector<8x1xi32>
    %26 = arith.cmpi slt, %24, %25 : vector<8x1xi32>
    %cst_10 = arith.constant 0.000000e+00 : f32
    %27 = vector.broadcast %cst_10 : f32 to vector<8x1xf32>
    %28 = arith.select %26, %20, %27 : vector<8x1xi1>, vector<8x1xf32>
    %c0_11 = arith.constant 0 : index
    %c0_12 = arith.constant 0 : index
    %29 = vector.load %arg5[%c0_11, %c0_12] : memref<1x1xf32, #tpu.memory_space<vmem>>, vector<1x1xf32>
    %30 = vector.shape_cast %28 : vector<8x1xf32> to vector<1x8x1xf32>
    %cst_13 = arith.constant dense<0.000000e+00> : vector<1xf32>
    %31 = vector.multi_reduction <add>, %30, %cst_13 [1, 2] : vector<1x8x1xf32> to vector<1xf32>
    %32 = vector.shape_cast %31 : vector<1xf32> to vector<1x1x1xf32>
    %33 = vector.extract %32[0, 0, 0] : f32 from vector<1x1x1xf32>
    %34 = vector.broadcast %33 : f32 to vector<1x1xf32>
    %35 = arith.addf %29, %34 : vector<1x1xf32>
    %c0_14 = arith.constant 0 : index
    %c0_15 = arith.constant 0 : index
    %36 = vector.load %arg5[%c0_14, %c0_15] : memref<1x1xf32, #tpu.memory_space<vmem>>, vector<1x1xf32>
    tpu.vector_store %arg5[%c0_14, %c0_15], %35 {strides = array<i32>} : memref<1x1xf32, #tpu.memory_space<vmem>>, vector<1x1xf32>,
    %c0_i32_16 = arith.constant 0 : i32
    %37 = arith.cmpi eq, %arg0, %c0_i32_16 : i32
    %38 = arith.extui %37 : i1 to i32
    %c0_i32_17 = arith.constant 0 : i32
    %39 = arith.cmpi ne, %38, %c0_i32_17 : i32
    scf.if %39 {
      %c0_18 = arith.constant 0 : index
      %c0_19 = arith.constant 0 : index
      %40 = vector.load %arg5[%c0_18, %c0_19] : memref<1x1xf32, #tpu.memory_space<vmem>>, vector<1x1xf32>
      %cst_20 = arith.constant 6.250000e-02 : f32
      %41 = vector.broadcast %cst_20 : f32 to vector<1x1xf32>
      %42 = arith.mulf %40, %41 : vector<1x1xf32>
      %c0_21 = arith.constant 0 : index
      %c0_22 = arith.constant 0 : index
      %43 = vector.load %arg4[%c0_21, %c0_22] : memref<1x1xf32, #tpu.memory_space<vmem>>, vector<1x1xf32>
      tpu.vector_store %arg4[%c0_21, %c0_22], %42 {strides = array<i32>} : memref<1x1xf32, #tpu.memory_space<vmem>>, vector<1x1xf32>,
    } else {
    }
    return
  }
  func.func @transform_0(%arg0: i32) -> (i32, i32) {
    %c0_i32 = arith.constant 0 : i32
    %c0_i32_0 = arith.constant 0 : i32
    return %arg0, %c0_i32 : i32, i32
  }
  func.func @transform_1(%arg0: i32) -> (i32, i32) {
    %c0_i32 = arith.constant 0 : i32
    %c0_i32_0 = arith.constant 0 : i32
    return %arg0, %c0_i32 : i32, i32
  }
  func.func @transform_2(%arg0: i32) -> (i32, i32) {
    %c0_i32 = arith.constant 0 : i32
    %c0_i32_0 = arith.constant 0 : i32
    return %arg0, %c0_i32 : i32, i32
  }
  func.func @transform_3(%arg0: i32) -> (i32, i32) {
    %c0_i32 = arith.constant 0 : i32
    %c0_i32_0 = arith.constant 0 : i32
    %c0_i32_1 = arith.constant 0 : i32
    return %c0_i32, %c0_i32_0 : i32, i32
  }
}

</mosaic_0001>

<bundles_post_ra>
// kernel: tpu_custom_call.1
= control target key start
LH: loop header
LB: loop body
LE: loop exit
PB: predicated region body
PF: predicated region fallthrough
CT: control target
= control target key end

     0   :  { %8 = vsyncpa [#allocation4], 0  ;;  %s211_s0 = inlined_call_operand.vmem [shape: f32[8,32], index: 0, kind: input, shape index: {}]   ;;  %s212_s1 = inlined_call_operand.hbm [shape: f32[8,32], index: 1, kind: input, shape index: {}]   ;;  %s213_s2 = inlined_call_operand.vmem [shape: f32[8,1], index: 2, kind: input, shape index: {}]   ;;  %s214_s3 = inlined_call_operand.hbm [shape: f32[1,1], index: 3, kind: output, shape index: {}]  }
   0x1   :  { %9 = vsyncpa [#allocation5], 0  ;;  %s155_s12 = smov [#allocation3]   ;;  %s107_s16 = scalar_lea.hbm %s212_s1, 128 }
   0x2   :  { %s18_s13 = sshll.u32 %s155_s12, 4  ;;  %p108_p0 = scmp.ne.s32.totalorder %s212_s1, %s107_s16  ;;  %s19_s13 = int_to_ptr.vmem [resolvable:$true] %s18_s13 }
   0x3   :  { %p111_p1 = scmp.lt.u32.totalorder %s107_s16, %s212_s1 }
   0x5   :  { %p113_p2 = pnand %p111_p1, %p108_p0 }
   0x7   :  { %116 = shalt.err (!%p113_p2)
}
   0x8   :  { %s117_s21 = scalar_lea.vmem %s19_s13, 128  ;;  %p122_p4 = scmp.lt.s32.totalorder %s19_s13, %s19_s13 }
   0x9   :  { %p118_p3 = scmp.ne.s32.totalorder %s19_s13, %s117_s21  ;;  %p123_p5 = scmp.lt.s32.totalorder %s117_s21, %s117_s21 }
   0xb   :  { %p124_p6 = por %p123_p5, %p122_p4 }
   0xd   :  { %p125_p7 = pnand %p124_p6, %p118_p3 }
   0xf   :  { %128 = shalt.err (!%p125_p7)
}
  0x10   :  { %21 = dma.hbm_to_vmem [thread:$0]  %s212_s1, 128, %s19_s13, [#allocation4]  }
  0x11   :  { %151 = dma.done.wait [#allocation4], 128  }
  0x12   :  { %152 = vsyncadd [#allocation4], 4294967168  ;;  %v33_v0 = vld [vmem:[%s211_s0] sm:$0xff]  ;;  %vm38_vm0 = vcmask 261120   ;;  %vm64_vm3 = vcmask 7168   ;;  %vm31_vm4 = vcmask 0  }
  0x13   :  { %v34_v1 = vld [vmem:[#allocation3] sm:$0xff]  ;;  %v156_v20 = vmov 0.0  }
  0x14   :  { %v36_v2 = vsub.f32 %v33_v0, %v34_v1  ;;  %v35_v12 = vld [vmem:[%s213_s2] sm:$0xff]  ;;  %32 = vst.msk [vmem:[#allocation2] sm:$0x1] %vm31_vm4, %v156_v20  ;;  %s157_s2 = smov [#allocation6]  }
  0x15   :  { %v52_v14 = vsub.f32 1.0, %v35_v12  ;;  %s91_s27 = sshll.u32 %s157_s2, 4  ;;  %s92_s27 = int_to_ptr.vmem [resolvable:$true] %s91_s27 }
  0x16   :  { %v37_v3 = vmul.f32 %v36_v2, %v36_v2  ;;  %s129_s28 = scalar_lea.vmem %s92_s27, 16  ;;  %s133_s29 = scalar_lea.vmem %s92_s27, 32 }
  0x17   :  { %p130_p8 = scmp.ne.s32.totalorder %s92_s27, %s129_s28  ;;  %p134_p9 = scmp.lt.s32.totalorder %s92_s27, %s92_s27 }
  0x18   :  { %v39_v4 = vsel %vm38_vm0, %v37_v3, 0.0  ;;  %p135_p10 = scmp.lt.s32.totalorder %s133_s29, %s129_s28 }
  0x19   :  { %40 = vadd.xlane.f32.xlu0 %v39_v4 }
  0x1a   :  { %p136_p11 = por %p135_p10, %p134_p9 }
  0x1b   :  { %v63_v28 = vld [vmem:[#allocation2] sm:$0x1] }
  0x1c   :  { %p137_p12 = pnand %p136_p11, %p130_p8 }
  0xa6   :  { %v41_v5 = vpop.xlane.xlu0 %40 }
  0xa7   :  { %105 = vrsqrt.f32 %v41_v5  ;;  %vm44_vm1 = vcmp.eq.f32.partialorder %v41_v5, inf  ;;  %v47_v8 = vand.u32 2147483648, %v41_v5  ;;  %vm46_vm2 = vcmp.eq.f32.partialorder %v41_v5, 0.0 }
  0xa8   :  { %v51_v16 = vmul.f32 %v41_v5, %v35_v12 }
  0xb1   :  { %v106_v6 = vpop.eup %105 }
  0xb2   :  { %v43_v7 = vmul.f32 %v106_v6, %v41_v5 }
  0xb4   :  { %v45_v9 = vsel %vm44_vm1, %v41_v5, %v43_v7 }
  0xb5   :  { %v48_v10 = vsel %vm46_vm2, %v47_v8, %v45_v9 }
  0xb6   :  { %v49_v11 = vsub.f32 1.0, %v48_v10 }
  0xb8   :  { %v50_v13 = vmax.f32 %v49_v11, 0.0 }
  0xba   :  { %v53_v15 = vmul.f32 %v50_v13, %v50_v13 }
  0xbc   :  { %v54_v17 = vmul.f32 %v53_v15, %v52_v14 }
  0xbe   :  { %v55_v18 = vadd.f32 %v54_v17, %v51_v16 }
  0xc0   :  { %v65_v19 = vsel %vm64_vm3, %v55_v18, 0.0 }
  0xc1   :  { %66 = vadd.xlane.f32.xlu0 %v65_v19 }
 0x14e   :  { %v67_v21 = vpop.xlane.xlu0 %66 }
 0x14f   :  { %v68_v22 = vrot.slane %v67_v21, 4 }
 0x151   :  { %v69_v23 = vadd.f32 %v68_v22, %v67_v21 }
 0x153   :  { %v70_v24 = vrot.slane %v69_v23, 2 }
 0x155   :  { %v71_v25 = vadd.f32 %v70_v24, %v69_v23 }
 0x157   :  { %v72_v26 = vrot.slane %v71_v25, 1 }
 0x159   :  { %v73_v27 = vadd.f32 %v72_v26, %v71_v25 }
 0x15b   :  { %100 = vpush %v73_v27 }
 0x18c   :  { %s101_s0 = spop %100 }
 0x18d   :  { %v75_v29 = vstv %s101_s0 }
 0x18e   :  { %v76_v30 = vadd.f32 %v75_v29, %v63_v28 }
 0x190   :  { %78 = vst.msk [vmem:[#allocation2] sm:$0x1] %vm31_vm4, %v76_v30 }
 0x197   :  { %v82_v31 = vld [vmem:[#allocation2] sm:$0x1] }
 0x198   :  { %v83_v32 = vmul.f32 0.0625, %v82_v31 }
 0x19a   :  { %84 = vst.msk [vmem:[#allocation6] sm:$0x1] %vm31_vm4, %v83_v32 }
 0x19b   :  { %140 = shalt.err (!%p137_p12)
}
 0x19c   :  { %s141_s5 = scalar_lea.hbm %s214_s3, 16 }
 0x19d   :  { %p142_p13 = scmp.ne.s32.totalorder %s214_s3, %s141_s5  ;;  %p145_p0 = scmp.lt.u32.totalorder %s141_s5, %s214_s3 }
 0x19f   :  { %p147_p1 = pnand %p145_p0, %p142_p13 }
 0x1a1   :  { %150 = shalt.err (!%p147_p1)
}
 0x1a2   :  { %94 = dma.vmem_to_hbm [thread:$0]  %s92_s27, 16, %s214_s3, [#allocation5]  }
 0x1a3   :  { %153 = dma.done.wait [#allocation5], 16  }
 0x1a4   :  { %154 = vsyncadd [#allocation5], 4294967280 }
 0x1a5   :  { %98 = vsyncpa [#allocation4], 1 }
 0x1a6   :  { %99 = vsyncpa [#allocation5], 1 }

</bundles_post_ra>
